<compile_context>
chip_gen: v6e
topology: v6e:2x2x1
jax: 0.10.0
libtpu: 0.0.40
codegen_flags: <defaults>
</compile_context>

<pallas_src>
import functools

import jax
import jax.numpy as jnp
from jax.experimental import pallas as pl
from jax.experimental.pallas import tpu as pltpu

LANE = 128   # lane width (last-dim padding target)
SUB = 8      # sublane width (second-to-last-dim padding target)


def _round_up(n, m):
    return ((n + m - 1) // m) * m


def _qnet_kernel(x_ref, w_ref, b_ref, o_ref):
    # x_ref: f32  [B, in_size]  (raw, unpadded input; full-array block)
    # w_ref: bf16 [3, P, P]     (packed zero-padded w1, w2, w3; [in, out] layout)
    # b_ref: f32  [SUB, P]      (rows 0..2 hold b1, b2, b3; rest zero)
    # o_ref: f32  [B, P]
    in_size = x_ref.shape[1]
    x = x_ref[...].astype(jnp.bfloat16)

    # Static slices of the packed parameter slabs (ref views, no extra DMAs).
    w1 = w_ref[0, :in_size, :]
    w2 = w_ref[1]
    w3 = w_ref[2]
    b1 = b_ref[0:1, :]
    b2 = b_ref[1:2, :]
    b3 = b_ref[2:3, :]

    # bf16 MXU operands, f32 accumulation; bias + ReLU epilogue stays in f32.
    h1 = jnp.maximum(
        jnp.dot(x, w1, preferred_element_type=jnp.float32) + b1, 0.0)

    # TODO(synk): nn.Dropout(0.2) is identity in eval mode; training-mode
    # random masking/scaling is not reproduced here.

    h2 = jnp.maximum(
        jnp.dot(h1.astype(jnp.bfloat16), w2,
                preferred_element_type=jnp.float32) + b2, 0.0)

    out = jnp.dot(h2.astype(jnp.bfloat16), w3,
                  preferred_element_type=jnp.float32) + b3
    o_ref[...] = out.astype(o_ref.dtype)


def pack_params(params):
    """Pad every feature dim to a multiple of 128 and pack the six parameter
    arrays into two device buffers (one bf16 weight slab, one f32 bias slab)."""
    w1, b1 = params["w1"], params["b1"]
    w2, b2 = params["w2"], params["b2"]
    w3, b3 = params["w3"], params["b3"]
    dims = [w1.shape[0], w1.shape[1], w2.shape[1], w3.shape[1]]
    P = _round_up(max(dims), LANE)

    def pad_w(w):
        return jnp.zeros((P, P), jnp.float32).at[: w.shape[0], : w.shape[1]].set(w)

    def pad_b(b):
        b = b.reshape(-1)
        return jnp.zeros((P,), jnp.float32).at[: b.shape[0]].set(b)

    W = jnp.stack([pad_w(w1), pad_w(w2), pad_w(w3)]).astype(jnp.bfloat16)
    Bm = jnp.zeros((SUB, P), jnp.float32).at[:3].set(
        jnp.stack([pad_b(b1), pad_b(b2), pad_b(b3)]))
    return {"W": W, "B": Bm, "P": P,
            "in_size": w1.shape[0], "out_size": w3.shape[1]}


@functools.partial(jax.jit, static_argnames=("out_size",))
def _qnet_forward_jit(x, W, Bm, *, out_size):
    B, in_size = x.shape
    P = W.shape[-1]

    flops = 2 * B * P * (in_size + 2 * P)
    bytes_accessed = (x.size * 4) + (W.size * 2) + (Bm.size * 4) + (B * P * 4)

    full = lambda a: pl.BlockSpec(a.shape, lambda: (0,) * a.ndim,
                                  memory_space=pltpu.VMEM)

    out_padded = pl.pallas_call(
        _qnet_kernel,
        out_shape=jax.ShapeDtypeStruct((B, P), jnp.float32),
        in_specs=[full(x), full(W), full(Bm)],
        out_specs=pl.BlockSpec((B, P), lambda: (0, 0),
                               memory_space=pltpu.VMEM),
        cost_estimate=pl.CostEstimate(flops=flops, transcendentals=0,
                                      bytes_accessed=bytes_accessed),
    )(x, W, Bm)
    # Slice fuses inside this jit; the pallas output itself stays lane-dense.
    return out_padded[:, :out_size]


def qnet_forward(x, packed):
    """x: [B, input_size] float32. packed: output of pack_params."""
    assert x.shape[1] == packed["in_size"]
    return _qnet_forward_jit(x, packed["W"], packed["B"],
                             out_size=packed["out_size"])


def init_params(key, input_size, hidden_size, output_size):
    """Deterministic init mimicking PyTorch nn.Linear default (uniform +/- 1/sqrt(fan_in)).
    Weights stored [in_features, out_features] (transposed vs. nn.Linear)."""
    def linear(k, fan_in, fan_out):
        kw, kb = jax.random.split(k)
        bound = 1.0 / jnp.sqrt(fan_in)
        w = jax.random.uniform(kw, (fan_in, fan_out), jnp.float32, -bound, bound)
        b = jax.random.uniform(kb, (1, fan_out), jnp.float32, -bound, bound)
        return w, b

    k1, k2, k3 = jax.random.split(key, 3)
    w1, b1 = linear(k1, input_size, hidden_size)
    w2, b2 = linear(k2, hidden_size, hidden_size)
    w3, b3 = linear(k3, hidden_size, output_size)
    return {"w1": w1, "b1": b1, "w2": w2, "b2": b2, "w3": w3, "b3": b3}


if __name__ == "__main__":
    key = jax.random.PRNGKey(0)
    k_x, k_p = jax.random.split(key)

    batch = 8
    input_size = 16
    hidden_size = 32
    output_size = 4

    x = jax.random.normal(k_x, (batch, input_size), jnp.float32)
    params = init_params(k_p, input_size, hidden_size, output_size)
    packed = pack_params(params)

    out = qnet_forward(x, packed)
    out = jax.block_until_ready(out)

    # Reference check in plain JAX (same math, eval-mode dropout). Tolerance
    # loosened because MXU operands are bf16 (f32 accumulation).
    h = jnp.maximum(x @ params["w1"] + params["b1"], 0.0)
    h = jnp.maximum(h @ params["w2"] + params["b2"], 0.0)
    ref = h @ params["w3"] + params["b3"]
    assert out.shape == (batch, output_size)
    assert jnp.allclose(out, ref, atol=2e-2, rtol=2e-2)

    print("KERNEL_OK")
</pallas_src>

<mosaic_0001>
module attributes {stable_mosaic.version = 11 : i64} {
  func.func @_qnet_kernel(%arg0: memref<8x16xf32, #tpu.memory_space<vmem>>, %arg1: memref<3x128x128xbf16, #tpu.memory_space<vmem>>, %arg2: memref<8x128xf32, #tpu.memory_space<vmem>>, %arg3: memref<8x128xf32, #tpu.memory_space<vmem>>) attributes {dimension_semantics = [], scalar_prefetch = 0 : i64, scratch_operands = 0 : i64, tpu.core_type = #tpu.core_type<tc>} {
    %c0 = arith.constant 0 : index
    %c0_0 = arith.constant 0 : index
    %0 = vector.load %arg0[%c0, %c0_0] : memref<8x16xf32, #tpu.memory_space<vmem>>, vector<8x16xf32>
    %1 = arith.truncf %0 : vector<8x16xf32> to vector<8x16xbf16>
    %c0_1 = arith.constant 0 : index
    %c0_2 = arith.constant 0 : index
    %c0_3 = arith.constant 0 : index
    %2 = vector.load %arg1[%c0_1, %c0_2, %c0_3] : memref<3x128x128xbf16, #tpu.memory_space<vmem>>, vector<1x16x128xbf16>
    %3 = vector.shape_cast %2 : vector<1x16x128xbf16> to vector<16x128xbf16>
    %c1 = arith.constant 1 : index
    %c0_4 = arith.constant 0 : index
    %c0_5 = arith.constant 0 : index
    %4 = vector.load %arg1[%c1, %c0_4, %c0_5] : memref<3x128x128xbf16, #tpu.memory_space<vmem>>, vector<1x128x128xbf16>
    %5 = vector.shape_cast %4 : vector<1x128x128xbf16> to vector<128x128xbf16>
    %c2 = arith.constant 2 : index
    %c0_6 = arith.constant 0 : index
    %c0_7 = arith.constant 0 : index
    %6 = vector.load %arg1[%c2, %c0_6, %c0_7] : memref<3x128x128xbf16, #tpu.memory_space<vmem>>, vector<1x128x128xbf16>
    %7 = vector.shape_cast %6 : vector<1x128x128xbf16> to vector<128x128xbf16>
    %c0_8 = arith.constant 0 : index
    %c0_9 = arith.constant 0 : index
    %8 = vector.load %arg2[%c0_8, %c0_9] : memref<8x128xf32, #tpu.memory_space<vmem>>, vector<1x128xf32>
    %c1_10 = arith.constant 1 : index
    %c0_11 = arith.constant 0 : index
    %9 = vector.load %arg2[%c1_10, %c0_11] : memref<8x128xf32, #tpu.memory_space<vmem>>, vector<1x128xf32>
    %c2_12 = arith.constant 2 : index
    %c0_13 = arith.constant 0 : index
    %10 = vector.load %arg2[%c2_12, %c0_13] : memref<8x128xf32, #tpu.memory_space<vmem>>, vector<1x128xf32>
    %cst = arith.constant dense<0.000000e+00> : vector<8x128xf32>
    %11 = tpu.matmul %1, %3, %cst {dimension_numbers = #tpu.dot_dimension_numbers<[1], [0], [0], [1], [0, 0, 1, 1], [], []>} : vector<8x16xbf16>, vector<16x128xbf16>, vector<8x128xf32> -> vector<8x128xf32>
    %12 = vector.broadcast %8 : vector<1x128xf32> to vector<8x128xf32>
    %13 = arith.addf %11, %12 : vector<8x128xf32>
    %cst_14 = arith.constant 0.000000e+00 : f32
    %14 = vector.broadcast %cst_14 : f32 to vector<8x128xf32>
    %15 = arith.maximumf %13, %14 : vector<8x128xf32>
    %16 = arith.truncf %15 : vector<8x128xf32> to vector<8x128xbf16>
    %cst_15 = arith.constant dense<0.000000e+00> : vector<8x128xf32>
    %17 = tpu.matmul %16, %5, %cst_15 {dimension_numbers = #tpu.dot_dimension_numbers<[1], [0], [0], [1], [0, 0, 1, 1], [], []>} : vector<8x128xbf16>, vector<128x128xbf16>, vector<8x128xf32> -> vector<8x128xf32>
    %18 = vector.broadcast %9 : vector<1x128xf32> to vector<8x128xf32>
    %19 = arith.addf %17, %18 : vector<8x128xf32>
    %cst_16 = arith.constant 0.000000e+00 : f32
    %20 = vector.broadcast %cst_16 : f32 to vector<8x128xf32>
    %21 = arith.maximumf %19, %20 : vector<8x128xf32>
    %22 = arith.truncf %21 : vector<8x128xf32> to vector<8x128xbf16>
    %cst_17 = arith.constant dense<0.000000e+00> : vector<8x128xf32>
    %23 = tpu.matmul %22, %7, %cst_17 {dimension_numbers = #tpu.dot_dimension_numbers<[1], [0], [0], [1], [0, 0, 1, 1], [], []>} : vector<8x128xbf16>, vector<128x128xbf16>, vector<8x128xf32> -> vector<8x128xf32>
    %24 = vector.broadcast %10 : vector<1x128xf32> to vector<8x128xf32>
    %25 = arith.addf %23, %24 : vector<8x128xf32>
    %c0_18 = arith.constant 0 : index
    %c0_19 = arith.constant 0 : index
    %26 = vector.load %arg3[%c0_18, %c0_19] : memref<8x128xf32, #tpu.memory_space<vmem>>, vector<8x128xf32>
    tpu.vector_store %arg3[%c0_18, %c0_19], %25 {strides = array<i32>} : memref<8x128xf32, #tpu.memory_space<vmem>>, vector<8x128xf32>,
    return
  }
}

</mosaic_0001>

<bundles_post_ra>
// kernel: _qnet_forward_jit.1
= control target key start
LH: loop header
LB: loop body
LE: loop exit
PB: predicated region body
PF: predicated region fallthrough
CT: control target
= control target key end

     0   :  { %8 = vsyncpa [#allocation3], 0  ;;  %s576_s0 = inlined_call_operand.hbm [shape: f32[8,16], index: 0, kind: input, shape index: {}]   ;;  %s577_s1 = inlined_call_operand.hbm [shape: bf16[3,128,128], index: 1, kind: input, shape index: {}]   ;;  %s578_s2 = inlined_call_operand.hbm [shape: f32[8,128], index: 2, kind: input, shape index: {}]   ;;  %s579_s3 = inlined_call_operand.vmem [shape: f32[8,128], index: 3, kind: output, shape index: {}]  }
   0x1   :  { %9 = vsyncpa [#allocation5], 0  ;;  %s517_s12 = smov [#allocation4]  }
   0x2   :  { %s25_s13 = sshll.u32 %s517_s12, 4  ;;  %s26_s13 = int_to_ptr.vmem [resolvable:$true] %s25_s13 }
   0x3   :  { %s461_s14 = scalar_lea.vmem %s26_s13, 3072  ;;  %p466_p1 = scmp.lt.s32.totalorder %s26_s13, %s26_s13 }
   0x4   :  { %p462_p0 = scmp.ne.s32.totalorder %s26_s13, %s461_s14  ;;  %p467_p2 = scmp.lt.s32.totalorder %s461_s14, %s461_s14 }
   0x6   :  { %p468_p3 = por %p467_p2, %p466_p1 }
   0x8   :  { %p469_p4 = pnand %p468_p3, %p462_p0 }
   0xa   :  { %472 = shalt.err (!%p469_p4)
}
   0xb   :  { %s518_s15 = smov 64   ;;  %s519_s16 = smov 4  }
   0xc   :  { %31 = dma.hbm_to_vmem [thread:$0]  %s577_s1, 3072, %s26_s13, [#allocation5], %s518_s15, %s518_s15, %s519_s16  }
   0xd   :  { %s520_s19 = smov [#allocation2]   ;;  %s521_s21 = smov [#allocation6]  }
   0xe   :  { %s16_s20 = sshll.u32 %s520_s19, 4  ;;  %s38_s22 = sshll.u32 %s521_s21, 4  ;;  %s17_s20 = int_to_ptr.vmem [resolvable:$true] %s16_s20  ;;  %s39_s22 = int_to_ptr.vmem [resolvable:$true] %s38_s22 }
   0xf   :  { %s481_s23 = scalar_lea.vmem %s17_s20, 128  ;;  %p486_p6 = scmp.lt.s32.totalorder %s17_s20, %s17_s20 }
  0x10   :  { %p482_p5 = scmp.ne.s32.totalorder %s17_s20, %s481_s23  ;;  %p487_p7 = scmp.lt.s32.totalorder %s481_s23, %s481_s23 }
  0x12   :  { %p488_p8 = por %p487_p7, %p486_p6 }
  0x14   :  { %p489_p9 = pnand %p488_p8, %p482_p5 }
  0x16   :  { %492 = shalt.err (!%p489_p9)
}
  0x17   :  { %19 = dma.hbm_to_vmem [thread:$0]  %s576_s0, 128, %s17_s20, [#allocation3]  }
  0x18   :  { %s501_s26 = scalar_lea.vmem %s39_s22, 128  ;;  %p506_p11 = scmp.lt.s32.totalorder %s39_s22, %s39_s22 }
  0x19   :  { %p502_p10 = scmp.ne.s32.totalorder %s39_s22, %s501_s26  ;;  %p507_p12 = scmp.lt.s32.totalorder %s501_s26, %s501_s26 }
  0x1b   :  { %p508_p13 = por %p507_p12, %p506_p11 }
  0x1d   :  { %p509_p0 = pnand %p508_p13, %p502_p10 }
  0x1f   :  { %512 = shalt.err (!%p509_p0)
}
  0x20   :  { %41 = dma.hbm_to_vmem [thread:$0]  %s578_s2, 128, %s39_s22, [#allocation5]  }
  0x21   :  { %513 = dma.done.wait [#allocation3], 128  }
  0x22   :  { %514 = vsyncadd [#allocation3], 4294967168 }
  0x23   :  { %515 = dma.done.wait [#allocation5], 3200  }
  0x24   :  { %516 = vsyncadd [#allocation5], 4294964096  ;;  %v522_v0 = vmov 0.0   ;;  %vm523_vm0 = vmmov 0   ;;  %v436_v1 = vld [vmem:[#allocation4] sm:$0xff]   ;;  %v52_v2 = vld [vmem:[#allocation2] sm:$0xff] }
  0x25   :  { %383 = vmatprep.subr.bf16.mxu0 %v522_v0  ;;  %385 = vmatprep.mubr.msk.bf16.mxu0 %vm523_vm0, %v522_v0  ;;  %v53_v3 = vpack.c.bf16 %v52_v2, %v52_v2  ;;  %vm103_vm1 = vcmask 130048   ;;  %v437_v4 = vld [vmem:[#allocation4 + $0x78] sm:$0xff]   ;;  %v438_v5 = vld [vmem:[#allocation4 + $0x70] sm:$0xff]   ;;  %v439_v6 = vld [vmem:[#allocation4 + $0x68] sm:$0xff]  }
  0x26   :  { %389 = vmatprep.subr.bf16.mxu1 %v522_v0  ;;  %405 = vmatprep.mubr.msk.bf16.mxu1 %vm523_vm0, %v522_v0  ;;  %v440_v7 = vld [vmem:[#allocation4 + $0x60] sm:$0xff]   ;;  %v441_v8 = vld [vmem:[#allocation4 + $0x58] sm:$0xff]   ;;  %v442_v9 = vld [vmem:[#allocation4 + $0x50] sm:$0xff]  }
  0x27   :  { %384 = vmatpush3.bf16.msra.mxu0 %v436_v1  ;;  %390 = vmatpush3.bf16.msra.mxu1 %v437_v4  ;;  %v443_v10 = vld [vmem:[#allocation4 + $0x48] sm:$0xff]   ;;  %v444_v11 = vld [vmem:[#allocation4 + $0x40] sm:$0xff]   ;;  %v445_v12 = vld [vmem:[#allocation4 + $0xb8] sm:$0xff]  }
  0x28   :  { %409 = vmatprep.subr.bf16.mxu0 %v522_v0  ;;  %391 = vmatprep.subr.bf16.mxu1 %v522_v0  ;;  %v446_v13 = vld [vmem:[#allocation4 + $0xb0] sm:$0xff]   ;;  %v447_v14 = vld [vmem:[#allocation4 + $0xa8] sm:$0xff]   ;;  %v448_v15 = vld [vmem:[#allocation4 + $0xa0] sm:$0xff]  }
  0x29   :  { %v449_v16 = vld [vmem:[#allocation4 + $0x98] sm:$0xff]   ;;  %v450_v17 = vld [vmem:[#allocation4 + $0x90] sm:$0xff]   ;;  %v342_v18 = vld [vmem:[#allocation6] ss:$0 sm:$0xff] }
  0x2a   :  { %386 = vmatmul.mubr.msk.bf16.vlgmr.msra.gmra.mxu0 %vm103_vm1, %v53_v3  ;;  %v451_v26 = vld [vmem:[#allocation4 + $0x88] sm:$0xff]   ;;  %v452_v27 = vld [vmem:[#allocation4 + $0x80] sm:$0xff]  }
  0x2b   :  { %425 = vmatprep.mubr.msk.bf16.mxu0 %vm523_vm0, %v522_v0  ;;  %392 = vmatpush3.bf16.msra.mxu1 %v438_v5  ;;  %v345_v28 = vld [vmem:[#allocation6 + $0x1] ss:$0 sm:$0xff]  ;;  %v354_v36 = vld [vmem:[#allocation6 + $0x2] ss:$0 sm:$0xff] }
  0x2c   :  { %393 = vmatprep.subr.bf16.mxu1 %v522_v0  ;;  %410 = vmatpush3.bf16.msra.mxu0 %v445_v12 }
  0x2d   :  { %411 = vmatprep.subr.bf16.mxu0 %v522_v0 }
  0x2f   :  { %394 = vmatpush3.bf16.msra.mxu1 %v439_v6 }
  0x30   :  { %395 = vmatprep.subr.bf16.mxu1 %v522_v0  ;;  %412 = vmatpush3.bf16.msra.mxu0 %v446_v13 }
  0x31   :  { %413 = vmatprep.subr.bf16.mxu0 %v522_v0 }
  0x33   :  { %396 = vmatpush3.bf16.msra.mxu1 %v440_v7 }
  0x34   :  { %397 = vmatprep.subr.bf16.mxu1 %v522_v0  ;;  %414 = vmatpush3.bf16.msra.mxu0 %v447_v14 }
  0x35   :  { %415 = vmatprep.subr.bf16.mxu0 %v522_v0 }
  0x37   :  { %398 = vmatpush3.bf16.msra.mxu1 %v441_v8 }
  0x38   :  { %399 = vmatprep.subr.bf16.mxu1 %v522_v0  ;;  %416 = vmatpush3.bf16.msra.mxu0 %v448_v15 }
  0x39   :  { %417 = vmatprep.subr.bf16.mxu0 %v522_v0 }
  0x3b   :  { %400 = vmatpush3.bf16.msra.mxu1 %v442_v9 }
  0x3c   :  { %401 = vmatprep.subr.bf16.mxu1 %v522_v0  ;;  %418 = vmatpush3.bf16.msra.mxu0 %v449_v16 }
  0x3d   :  { %419 = vmatprep.subr.bf16.mxu0 %v522_v0 }
  0x3f   :  { %402 = vmatpush3.bf16.msra.mxu1 %v443_v10 }
  0x40   :  { %403 = vmatprep.subr.bf16.mxu1 %v522_v0  ;;  %420 = vmatpush3.bf16.msra.mxu0 %v450_v17 }
  0x41   :  { %421 = vmatprep.subr.bf16.mxu0 %v522_v0 }
  0x43   :  { %404 = vmatpush3.bf16.msra.mxu1 %v444_v11 }
  0x44   :  { %422 = vmatpush3.bf16.msra.mxu0 %v451_v26 }
  0x45   :  { %423 = vmatprep.subr.bf16.mxu0 %v522_v0 }
  0x48   :  { %424 = vmatpush3.bf16.msra.mxu0 %v452_v27 }
  0xea   :  { %v141_v19 = vpop.f32.mrf.mxu0 }
  0xeb   :  { %v142_v20 = vadd.f32 %v342_v18, %v141_v19 }
  0xec   :  { %v387_v21 = vpop.f32.mrf.mxu0 }
  0xed   :  { %v147_v22 = vmax.f32 %v142_v20, 0.0 }
  0xee   :  { %v144_v23 = vpop.f32.mrf.mxu0 }
  0xef   :  { %v148_v24 = vpack.c.bf16 %v147_v22, %v147_v22 }
  0xf0   :  { %v388_v25 = vpop.f32.mrf.mxu0 }
  0xf1   :  { %406 = vmatmul.mubr.bf16.vlgmr.msra.gmra.mxu1 %v148_v24 }
 0x1b1   :  { %v235_v29 = vpop.f32.mrf.mxu1 }
 0x1b2   :  { %v236_v30 = vadd.f32 %v345_v28, %v235_v29 }
 0x1b3   :  { %v407_v31 = vpop.f32.mrf.mxu1 }
 0x1b4   :  { %v241_v32 = vmax.f32 %v236_v30, 0.0 }
 0x1b5   :  { %v238_v33 = vpop.f32.mrf.mxu1 }
 0x1b6   :  { %v242_v34 = vpack.c.bf16 %v241_v32, %v241_v32 }
 0x1b7   :  { %v408_v35 = vpop.f32.mrf.mxu1 }
 0x1b8   :  { %426 = vmatmul.mubr.bf16.vlgmr.msra.gmra.mxu0 %v242_v34 }
 0x278   :  { %v329_v37 = vpop.f32.mrf.mxu0 }
 0x279   :  { %v330_v38 = vadd.f32 %v354_v36, %v329_v37 }
 0x27a   :  { %v427_v39 = vpop.f32.mrf.mxu0 }
 0x27b   :  { %335 = vst [vmem:[%s579_s3] sm:$0xff] %v330_v38 }
 0x27c   :  { %v332_v40 = vpop.f32.mrf.mxu0 }
 0x27e   :  { %v428_v41 = vpop.f32.mrf.mxu0 }
 0x27f   :  { %340 = vsyncpa [#allocation3], 1 }
 0x280   :  { %341 = vsyncpa [#allocation5], 1 }

</bundles_post_ra>
